<compile_context>
chip_gen: v7x
topology: tpu7x:2x2x1
jax: 0.10.0
libtpu: 0.0.40
codegen_flags: <defaults>
</compile_context>

<pallas_src>
import functools

import jax
import jax.numpy as jnp
from jax.experimental import pallas as pl
from jax.experimental.pallas import tpu as pltpu


def _round_up(x, m):
    return (x + m - 1) // m * m


def _query_bank_kernel(tok_ref, wt_ref, gb_ref, bank_ref, out_ref, *, K, dim_out):
    # tok_ref : (TB, dim)           bank tokens for this batch block
    # wt_ref  : (dim, banksize)     selector weight, pre-transposed (y = x @ W^T)
    # gb_ref  : (TB, banksize)      gumbel noise + selector bias (folded in wrapper)
    # bank_ref: (banksize, dim_out) query bank, columns zero-padded to 128 multiple
    # out_ref : (TB, K*dim_out)     k-th selected row at lanes [k*dim_out,(k+1)*dim_out)
    banksize = bank_ref.shape[0]

    # Selector logits on the MXU; softmax / tau dropped: order-preserving for tau > 0.
    y = jnp.dot(tok_ref[...], wt_ref[...],
                preferred_element_type=jnp.float32) + gb_ref[...]      # (TB, banksize)

    iota = jax.lax.broadcasted_iota(jnp.int32, y.shape, 1)

    # K iterative argmax steps; ties broken by lowest index (matches stable argsort).
    p = y
    for k in range(K):
        mx = jnp.max(p, axis=-1, keepdims=True)                        # (TB, 1)
        idx = jnp.min(jnp.where(p == mx, iota, banksize),
                      axis=-1, keepdims=True)                          # (TB, 1)
        sel = iota == idx                                              # (TB, banksize)
        p = jnp.where(sel, -jnp.inf, p)
        onehot = sel.astype(bank_ref.dtype)
        # Batched row gather: (TB, banksize) @ (banksize, dim_out).  HIGHEST keeps
        # the gathered rows bit-exact for f32 banks (one-hot weights).
        chunk = jnp.dot(onehot, bank_ref[...],
                        preferred_element_type=jnp.float32,
                        precision=jax.lax.Precision.HIGHEST)
        # Static, lane-dense per-k store: bounds the live set to a single chunk.
        out_ref[:, k * dim_out:(k + 1) * dim_out] = chunk.astype(out_ref.dtype)


def _vmem_limit_bytes(block_shapes_dtypes):
    def tile_bytes(shape, dtype):
        r, c = shape[-2], shape[-1]
        return _round_up(r, 8) * _round_up(c, 128) * jnp.dtype(dtype).itemsize
    # All pipelined blocks counted double-buffered (conservative).
    resident = sum(2 * tile_bytes(s, d) for s, d in block_shapes_dtypes)
    # >= v6e/v7x default scoped limit, capped at 48 MiB to stay well inside
    # v7x's 64 MiB physical VMEM.
    return int(min(max(resident + (4 << 20), 32 << 20), 48 << 20))


def query_bank_forward(x, num_compressed_tokens, bank, w, b, key, *,
                       tau=1.0, block_b=128):
    """Returns (x[:, :-1], bank[argsort(gumbel_softmax(selector(x[:, -1])))[:, :K]])."""
    assert tau > 0.0  # ordering is independent of tau for tau > 0
    B, N, dim = x.shape
    banksize, bank_dim = bank.shape
    assert bank_dim == dim
    K = int(num_compressed_tokens)
    assert 0 < K <= banksize, "num_compressed_tokens must be in (0, banksize]"

    x_out = x[:, 0:-1]                 # glue: token slice stays in JAX
    bank_token = x[:, -1]              # (B, dim)

    # Gumbel noise (torch samples it inside F.gumbel_softmax; sampled here from a
    # JAX key so the pure-JAX reference can replay it), with the selector bias
    # folded in so it never becomes a separate kernel input stream.
    u = jax.random.uniform(key, (B, banksize), dtype=jnp.float32,
                           minval=1e-10, maxval=1.0)
    gb = -jnp.log(-jnp.log(u)) + b.astype(jnp.float32)[None, :]

    # Batch blocking: TB a multiple of 8 (sublane-dense) and sized so the grid
    # has >= 2 steps once B > 8 (v7x: shard "parallel" axis over 2 TensorCores).
    TB = min(block_b, _round_up(max(pl.cdiv(B, 2), 1), 8))
    Bp = _round_up(B, TB)
    if Bp != B:
        pad = ((0, Bp - B), (0, 0))
        bank_token = jnp.pad(bank_token, pad)
        gb = jnp.pad(gb, pad)

    # Lane-dense output chunks: pad bank columns to a multiple of 128 so every
    # per-k store is an unmasked full-lane store; strip the padding afterwards.
    dim_out = _round_up(dim, 128)
    bank_p = bank if dim_out == dim else jnp.pad(bank, ((0, 0), (0, dim_out - dim)))

    wt = w.T                           # pre-transpose once, outside the kernel
    out_dtype = bank.dtype

    kernel = functools.partial(_query_bank_kernel, K=K, dim_out=dim_out)

    block_shapes_dtypes = [
        ((TB, dim), bank_token.dtype),
        ((dim, banksize), wt.dtype),
        ((TB, banksize), gb.dtype),
        ((banksize, dim_out), bank_p.dtype),
        ((TB, K * dim_out), out_dtype),
    ]

    selected_flat = pl.pallas_call(
        kernel,
        out_shape=jax.ShapeDtypeStruct((Bp, K * dim_out), out_dtype),
        grid_spec=pltpu.PrefetchScalarGridSpec(
            num_scalar_prefetch=0,
            grid=(Bp // TB,),
            in_specs=[
                pl.BlockSpec((TB, dim), lambda bi: (bi, 0)),           # bank_token
                pl.BlockSpec((dim, banksize), lambda bi: (0, 0)),      # W^T (invariant)
                pl.BlockSpec((TB, banksize), lambda bi: (bi, 0)),      # gumbel + bias
                pl.BlockSpec((banksize, dim_out), lambda bi: (0, 0)),  # bank (invariant)
            ],
            out_specs=pl.BlockSpec((TB, K * dim_out), lambda bi: (bi, 0)),
        ),
        compiler_params=pltpu.CompilerParams(
            dimension_semantics=("parallel",),
            vmem_limit_bytes=_vmem_limit_bytes(block_shapes_dtypes),
        ),
    )(bank_token, wt, gb, bank_p)

    selected = selected_flat[:B].reshape(B, K, dim_out)[:, :, :dim]
    return x_out, selected


def _reference(x, num_compressed_tokens, bank, w, b, key, tau=1.0):
    # Faithful port of the PyTorch forward (gumbel softmax + descending argsort).
    B, N, dim = x.shape
    banksize = bank.shape[0]
    K = int(num_compressed_tokens)
    x_out = x[:, 0:-1]
    bank_token = x[:, -1]
    u = jax.random.uniform(key, (B, banksize), dtype=jnp.float32,
                           minval=1e-10, maxval=1.0)
    g = -jnp.log(-jnp.log(u))
    logits = bank_token @ w.T + b
    y = jax.nn.softmax((logits + g) / tau, axis=-1)
    order = jnp.argsort(-y, axis=-1)
    return x_out, bank[order[:, :K]]


if __name__ == "__main__":
    B, N, dim = 2, 9, 32          # N = 8 regular tokens + 1 bank token
    banksize = 16
    num_compressed_tokens = 4

    root = jax.random.PRNGKey(0)
    k_x, k_bank, k_w, k_b, k_gumbel = jax.random.split(root, 5)

    x = jax.random.normal(k_x, (B, N, dim), dtype=jnp.float32)
    bank = jax.random.normal(k_bank, (banksize, dim), dtype=jnp.float32)
    bound = 1.0 / jnp.sqrt(dim)
    w = jax.random.uniform(k_w, (banksize, dim), minval=-bound, maxval=bound,
                           dtype=jnp.float32)
    b = jax.random.uniform(k_b, (banksize,), minval=-bound, maxval=bound,
                           dtype=jnp.float32)

    x_out, selected = query_bank_forward(
        x, num_compressed_tokens, bank, w, b, k_gumbel)
    jax.block_until_ready((x_out, selected))

    x_ref, sel_ref = _reference(x, num_compressed_tokens, bank, w, b, k_gumbel)
    assert x_out.shape == (B, N - 1, dim)
    assert selected.shape == (B, num_compressed_tokens, dim)
    assert jnp.allclose(x_out, x_ref)
    assert jnp.allclose(selected, sel_ref, atol=1e-5)

    print("KERNEL_OK")
</pallas_src>

<mosaic_0001>
module attributes {stable_mosaic.version = 11 : i64} {
  func.func @_query_bank_kernel(%arg0: i32, %arg1: memref<8x32xf32, #tpu.memory_space<vmem>>, %arg2: memref<32x16xf32, #tpu.memory_space<vmem>>, %arg3: memref<8x16xf32, #tpu.memory_space<vmem>>, %arg4: memref<16x128xf32, #tpu.memory_space<vmem>>, %arg5: memref<8x512xf32, #tpu.memory_space<vmem>>) attributes {dimension_semantics = [#tpu.dimension_semantics<parallel>], iteration_bounds = array<i64: 1>, scalar_prefetch = 0 : i64, scratch_operands = 0 : i64, tpu.core_type = #tpu.core_type<tc>, window_params = [{transform_indices = @transform_0, window_bounds = array<i64: 8, 32>}, {pipeline_mode = #tpu.pipeline_mode<synchronous>, transform_indices = @transform_1, window_bounds = array<i64: 32, 16>}, {transform_indices = @transform_2, window_bounds = array<i64: 8, 16>}, {pipeline_mode = #tpu.pipeline_mode<synchronous>, transform_indices = @transform_3, window_bounds = array<i64: 16, 128>}, {transform_indices = @transform_4, window_bounds = array<i64: 8, 512>}]} {
    %c0 = arith.constant 0 : index
    %c0_0 = arith.constant 0 : index
    %0 = vector.load %arg1[%c0, %c0_0] : memref<8x32xf32, #tpu.memory_space<vmem>>, vector<8x32xf32>
    %c0_1 = arith.constant 0 : index
    %c0_2 = arith.constant 0 : index
    %1 = vector.load %arg2[%c0_1, %c0_2] : memref<32x16xf32, #tpu.memory_space<vmem>>, vector<32x16xf32>
    %cst = arith.constant dense<0.000000e+00> : vector<8x16xf32>
    %2 = tpu.matmul %0, %1, %cst {dimension_numbers = #tpu.dot_dimension_numbers<[1], [0], [0], [1], [0, 0, 1, 1], [], []>} : vector<8x32xf32>, vector<32x16xf32>, vector<8x16xf32> -> vector<8x16xf32>
    %c0_3 = arith.constant 0 : index
    %c0_4 = arith.constant 0 : index
    %3 = vector.load %arg3[%c0_3, %c0_4] : memref<8x16xf32, #tpu.memory_space<vmem>>, vector<8x16xf32>
    %4 = arith.addf %2, %3 : vector<8x16xf32>
    %5 = tpu.iota {dimensions = array<i32: 1>} : vector<8x16xi32>
    %cst_5 = arith.constant dense<0xFF800000> : vector<8xf32>
    %6 = vector.multi_reduction <maximumf>, %4, %cst_5 [1] : vector<8x16xf32> to vector<8xf32>
    %7 = vector.shape_cast %6 : vector<8xf32> to vector<8x1xf32>
    %8 = vector.broadcast %7 : vector<8x1xf32> to vector<8x16xf32>
    %9 = arith.cmpf oeq, %4, %8 : vector<8x16xf32>
    %c16_i32 = arith.constant 16 : i32
    %10 = vector.broadcast %c16_i32 : i32 to vector<8x16xi32>
    %11 = arith.select %9, %5, %10 : vector<8x16xi1>, vector<8x16xi32>
    %cst_6 = arith.constant dense<2147483647> : vector<8xi32>
    %12 = vector.multi_reduction <minsi>, %11, %cst_6 [1] : vector<8x16xi32> to vector<8xi32>
    %13 = vector.shape_cast %12 : vector<8xi32> to vector<8x1xi32>
    %14 = vector.broadcast %13 : vector<8x1xi32> to vector<8x16xi32>
    %15 = arith.cmpi eq, %5, %14 : vector<8x16xi32>
    %cst_7 = arith.constant 0xFF800000 : f32
    %16 = vector.broadcast %cst_7 : f32 to vector<8x16xf32>
    %17 = arith.select %15, %16, %4 : vector<8x16xi1>, vector<8x16xf32>
    %18 = arith.extui %15 : vector<8x16xi1> to vector<8x16xi32>
    %19 = arith.sitofp %18 : vector<8x16xi32> to vector<8x16xf32>
    %c0_8 = arith.constant 0 : index
    %c0_9 = arith.constant 0 : index
    %20 = vector.load %arg4[%c0_8, %c0_9] : memref<16x128xf32, #tpu.memory_space<vmem>>, vector<16x128xf32>
    %cst_10 = arith.constant dense<0.000000e+00> : vector<8x128xf32>
    %21 = tpu.matmul %19, %20, %cst_10 {dimension_numbers = #tpu.dot_dimension_numbers<[1], [0], [0], [1], [0, 0, 1, 1], [], []>, precision = #tpu.contract_precision<fp32>} : vector<8x16xf32>, vector<16x128xf32>, vector<8x128xf32> -> vector<8x128xf32>
    %c0_11 = arith.constant 0 : index
    %c0_12 = arith.constant 0 : index
    %22 = vector.load %arg5[%c0_11, %c0_12] : memref<8x512xf32, #tpu.memory_space<vmem>>, vector<8x128xf32>
    tpu.vector_store %arg5[%c0_11, %c0_12], %21 {strides = array<i32>} : memref<8x512xf32, #tpu.memory_space<vmem>>, vector<8x128xf32>,
    %cst_13 = arith.constant dense<0xFF800000> : vector<8xf32>
    %23 = vector.multi_reduction <maximumf>, %17, %cst_13 [1] : vector<8x16xf32> to vector<8xf32>
    %24 = vector.shape_cast %23 : vector<8xf32> to vector<8x1xf32>
    %25 = vector.broadcast %24 : vector<8x1xf32> to vector<8x16xf32>
    %26 = arith.cmpf oeq, %17, %25 : vector<8x16xf32>
    %c16_i32_14 = arith.constant 16 : i32
    %27 = vector.broadcast %c16_i32_14 : i32 to vector<8x16xi32>
    %28 = arith.select %26, %5, %27 : vector<8x16xi1>, vector<8x16xi32>
    %cst_15 = arith.constant dense<2147483647> : vector<8xi32>
    %29 = vector.multi_reduction <minsi>, %28, %cst_15 [1] : vector<8x16xi32> to vector<8xi32>
    %30 = vector.shape_cast %29 : vector<8xi32> to vector<8x1xi32>
    %31 = vector.broadcast %30 : vector<8x1xi32> to vector<8x16xi32>
    %32 = arith.cmpi eq, %5, %31 : vector<8x16xi32>
    %cst_16 = arith.constant 0xFF800000 : f32
    %33 = vector.broadcast %cst_16 : f32 to vector<8x16xf32>
    %34 = arith.select %32, %33, %17 : vector<8x16xi1>, vector<8x16xf32>
    %35 = arith.extui %32 : vector<8x16xi1> to vector<8x16xi32>
    %36 = arith.sitofp %35 : vector<8x16xi32> to vector<8x16xf32>
    %c0_17 = arith.constant 0 : index
    %c0_18 = arith.constant 0 : index
    %37 = vector.load %arg4[%c0_17, %c0_18] : memref<16x128xf32, #tpu.memory_space<vmem>>, vector<16x128xf32>
    %cst_19 = arith.constant dense<0.000000e+00> : vector<8x128xf32>
    %38 = tpu.matmul %36, %37, %cst_19 {dimension_numbers = #tpu.dot_dimension_numbers<[1], [0], [0], [1], [0, 0, 1, 1], [], []>, precision = #tpu.contract_precision<fp32>} : vector<8x16xf32>, vector<16x128xf32>, vector<8x128xf32> -> vector<8x128xf32>
    %c0_20 = arith.constant 0 : index
    %c128 = arith.constant 128 : index
    %39 = vector.load %arg5[%c0_20, %c128] : memref<8x512xf32, #tpu.memory_space<vmem>>, vector<8x128xf32>
    tpu.vector_store %arg5[%c0_20, %c128], %38 {strides = array<i32>} : memref<8x512xf32, #tpu.memory_space<vmem>>, vector<8x128xf32>,
    %cst_21 = arith.constant dense<0xFF800000> : vector<8xf32>
    %40 = vector.multi_reduction <maximumf>, %34, %cst_21 [1] : vector<8x16xf32> to vector<8xf32>
    %41 = vector.shape_cast %40 : vector<8xf32> to vector<8x1xf32>
    %42 = vector.broadcast %41 : vector<8x1xf32> to vector<8x16xf32>
    %43 = arith.cmpf oeq, %34, %42 : vector<8x16xf32>
    %c16_i32_22 = arith.constant 16 : i32
    %44 = vector.broadcast %c16_i32_22 : i32 to vector<8x16xi32>
    %45 = arith.select %43, %5, %44 : vector<8x16xi1>, vector<8x16xi32>
    %cst_23 = arith.constant dense<2147483647> : vector<8xi32>
    %46 = vector.multi_reduction <minsi>, %45, %cst_23 [1] : vector<8x16xi32> to vector<8xi32>
    %47 = vector.shape_cast %46 : vector<8xi32> to vector<8x1xi32>
    %48 = vector.broadcast %47 : vector<8x1xi32> to vector<8x16xi32>
    %49 = arith.cmpi eq, %5, %48 : vector<8x16xi32>
    %cst_24 = arith.constant 0xFF800000 : f32
    %50 = vector.broadcast %cst_24 : f32 to vector<8x16xf32>
    %51 = arith.select %49, %50, %34 : vector<8x16xi1>, vector<8x16xf32>
    %52 = arith.extui %49 : vector<8x16xi1> to vector<8x16xi32>
    %53 = arith.sitofp %52 : vector<8x16xi32> to vector<8x16xf32>
    %c0_25 = arith.constant 0 : index
    %c0_26 = arith.constant 0 : index
    %54 = vector.load %arg4[%c0_25, %c0_26] : memref<16x128xf32, #tpu.memory_space<vmem>>, vector<16x128xf32>
    %cst_27 = arith.constant dense<0.000000e+00> : vector<8x128xf32>
    %55 = tpu.matmul %53, %54, %cst_27 {dimension_numbers = #tpu.dot_dimension_numbers<[1], [0], [0], [1], [0, 0, 1, 1], [], []>, precision = #tpu.contract_precision<fp32>} : vector<8x16xf32>, vector<16x128xf32>, vector<8x128xf32> -> vector<8x128xf32>
    %c0_28 = arith.constant 0 : index
    %c256 = arith.constant 256 : index
    %56 = vector.load %arg5[%c0_28, %c256] : memref<8x512xf32, #tpu.memory_space<vmem>>, vector<8x128xf32>
    tpu.vector_store %arg5[%c0_28, %c256], %55 {strides = array<i32>} : memref<8x512xf32, #tpu.memory_space<vmem>>, vector<8x128xf32>,
    %cst_29 = arith.constant dense<0xFF800000> : vector<8xf32>
    %57 = vector.multi_reduction <maximumf>, %51, %cst_29 [1] : vector<8x16xf32> to vector<8xf32>
    %58 = vector.shape_cast %57 : vector<8xf32> to vector<8x1xf32>
    %59 = vector.broadcast %58 : vector<8x1xf32> to vector<8x16xf32>
    %60 = arith.cmpf oeq, %51, %59 : vector<8x16xf32>
    %c16_i32_30 = arith.constant 16 : i32
    %61 = vector.broadcast %c16_i32_30 : i32 to vector<8x16xi32>
    %62 = arith.select %60, %5, %61 : vector<8x16xi1>, vector<8x16xi32>
    %cst_31 = arith.constant dense<2147483647> : vector<8xi32>
    %63 = vector.multi_reduction <minsi>, %62, %cst_31 [1] : vector<8x16xi32> to vector<8xi32>
    %64 = vector.shape_cast %63 : vector<8xi32> to vector<8x1xi32>
    %65 = vector.broadcast %64 : vector<8x1xi32> to vector<8x16xi32>
    %66 = arith.cmpi eq, %5, %65 : vector<8x16xi32>
    %67 = arith.extui %66 : vector<8x16xi1> to vector<8x16xi32>
    %68 = arith.sitofp %67 : vector<8x16xi32> to vector<8x16xf32>
    %c0_32 = arith.constant 0 : index
    %c0_33 = arith.constant 0 : index
    %69 = vector.load %arg4[%c0_32, %c0_33] : memref<16x128xf32, #tpu.memory_space<vmem>>, vector<16x128xf32>
    %cst_34 = arith.constant dense<0.000000e+00> : vector<8x128xf32>
    %70 = tpu.matmul %68, %69, %cst_34 {dimension_numbers = #tpu.dot_dimension_numbers<[1], [0], [0], [1], [0, 0, 1, 1], [], []>, precision = #tpu.contract_precision<fp32>} : vector<8x16xf32>, vector<16x128xf32>, vector<8x128xf32> -> vector<8x128xf32>
    %c0_35 = arith.constant 0 : index
    %c384 = arith.constant 384 : index
    %71 = vector.load %arg5[%c0_35, %c384] : memref<8x512xf32, #tpu.memory_space<vmem>>, vector<8x128xf32>
    tpu.vector_store %arg5[%c0_35, %c384], %70 {strides = array<i32>} : memref<8x512xf32, #tpu.memory_space<vmem>>, vector<8x128xf32>,
    return
  }
  func.func @transform_0(%arg0: i32) -> (i32, i32) {
    %c0_i32 = arith.constant 0 : i32
    %c0_i32_0 = arith.constant 0 : i32
    return %arg0, %c0_i32 : i32, i32
  }
  func.func @transform_1(%arg0: i32) -> (i32, i32) {
    %c0_i32 = arith.constant 0 : i32
    %c0_i32_0 = arith.constant 0 : i32
    %c0_i32_1 = arith.constant 0 : i32
    return %c0_i32, %c0_i32_0 : i32, i32
  }
  func.func @transform_2(%arg0: i32) -> (i32, i32) {
    %c0_i32 = arith.constant 0 : i32
    %c0_i32_0 = arith.constant 0 : i32
    return %arg0, %c0_i32 : i32, i32
  }
  func.func @transform_3(%arg0: i32) -> (i32, i32) {
    %c0_i32 = arith.constant 0 : i32
    %c0_i32_0 = arith.constant 0 : i32
    %c0_i32_1 = arith.constant 0 : i32
    return %c0_i32, %c0_i32_0 : i32, i32
  }
  func.func @transform_4(%arg0: i32) -> (i32, i32) {
    %c0_i32 = arith.constant 0 : i32
    %c0_i32_0 = arith.constant 0 : i32
    return %arg0, %c0_i32 : i32, i32
  }
}

</mosaic_0001>

<bundles_post_ra>
// kernel: tpu_custom_call.1
= control target key start
LH: loop header
LB: loop body
LE: loop exit
PB: predicated region body
PF: predicated region fallthrough
CT: control target
= control target key end

     0   :  { %v2488_v3 = vmov 0.0|0.0   ;;  %vm2489_vm0 = vmmov 0   ;;  %v2490_v6 = vmov 0.0   ;;  %s2699_s0 = inlined_call_operand.vmem [shape: f32[8,32], index: 0, kind: input, shape index: {}]   ;;  %s2700_s1 = inlined_call_operand.vmem [shape: f32[32,16], index: 1, kind: input, shape index: {}]   ;;  %s2701_s2 = inlined_call_operand.vmem [shape: f32[8,16], index: 2, kind: input, shape index: {}]   ;;  %s2702_s3 = inlined_call_operand.vmem [shape: f32[16,128], index: 3, kind: input, shape index: {}]   ;;  %s2703_s4 = inlined_call_operand.hbm [shape: f32[8,512], index: 4, kind: output, shape index: {}]  }
   0x1   :  { %v19_v0 = vld [vmem:[%s2700_s1] sm:$0xff]  ;;  %v20_v1 = vld [vmem:[%s2700_s1 + $0x8] sm:$0xff]  ;;  %v21_v2 = vld [vmem:[%s2700_s1 + $0x10] sm:$0xff]  ;;  %2343 = vmatprep.subr.bf16.mxu0 %v2488_v3  ;;  %2172 = vmatprep.mubr.msk.f32.mxu0 %vm2489_vm0, %v2490_v6 }
   0x2   :  { %v2344_v4 = vpack.c.bf16 %v20_v1, %v19_v0  ;;  %v22_v5 = vld [vmem:[%s2700_s1 + $0x18] sm:$0xff]  ;;  %2349 = vmatprep.subr.bf16.mxu1 %v2488_v3  ;;  %2179 = vmatprep.mubr.msk.f32.mxu1 %vm2489_vm0, %v2490_v6 }
   0x3   :  { %9 = vsyncpa [#allocation3], 0  ;;  %v2347_v7 = vpack.c.bf16 %v22_v5, %v21_v2  ;;  %v18_v8 = vld [vmem:[%s2699_s0] sm:$0xff]  ;;  %vm24_vm1 = vcmask 261120   ;;  %vm100_vm2 = vcmask 130048   ;;  %v98_v14 = vlaneseq  ;;  %v126_v26 = vld [vmem:[%s2702_s3 + $0x8] sm:$0xff] }
   0x4   :  { %2345 = vmatpush3.bf16.msra.mxu0 %v2344_v4  ;;  %v23_v9 = vld [vmem:[%s2701_s2] sm:$0xff]  ;;  %v134_v28 = vand.u32 4294901760, %v126_v26 }
   0x5   :  { %2346 = vmatprep.subr.bf16.mxu0 %v2488_v3  ;;  %v2546_v15 = vand.u32 127, %v98_v14  ;;  %v125_v25 = vld [vmem:[%s2702_s3] sm:$0xff]  ;;  %s2491_s3 = smov [#allocation2]  }
   0x6   :  { %v131_v27 = vand.u32 4294901760, %v125_v25  ;;  %v216_v31 = vsub.f32 %v126_v26, %v134_v28  ;;  %s2062_s28 = sshll.u32 %s2491_s3, 4  ;;  %s2063_s28 = int_to_ptr.vmem [resolvable:$true] %s2062_s28 }
   0x7   :  { %s2464_s29 = scalar_lea.vmem %s2063_s28, 512  ;;  %p2469_p1 = scmp.lt.s32.totalorder %s2063_s28, %s2063_s28 }
   0x8   :  { %2348 = vmatpush3.bf16.msra.mxu0 %v2347_v7  ;;  %v2556_v29 = vpack.c.bf16 %v134_v28, %v131_v27  ;;  %v209_v30 = vsub.f32 %v125_v25, %v131_v27  ;;  %v217_v33 = vand.u32 4294901760, %v216_v31  ;;  %p2465_p0 = scmp.ne.s32.totalorder %s2063_s28, %s2464_s29  ;;  %p2470_p2 = scmp.lt.s32.totalorder %s2464_s29, %s2464_s29 }
   0x9   :  { %2370 = vmatprep.subr.bf16.mxu0 %v2488_v3 }
   0xa   :  { %2351 = vmatpush3.bf16.msra.mxu1 %v2556_v29  ;;  %v210_v32 = vand.u32 4294901760, %v209_v30  ;;  %v218_v35 = vsub.f32 %v216_v31, %v217_v33  ;;  %v2564_v39 = vpack.c.bf16 %v216_v31, %v209_v30  ;;  %p2471_p3 = por %p2470_p2, %p2469_p1 }
   0xb   :  { %2173 = vmatmul.mubr.msk.f32.vlgmr.msra.gmra.mrb[0].mxu0 %vm24_vm1, %v18_v8  ;;  %2352 = vmatprep.subr.bf16.mxu1 %v2488_v3 }
   0xc   :  { %2228 = vmatprep.mubr.msk.f32.mxu0 %vm2489_vm0, %v2490_v6  ;;  %v211_v34 = vsub.f32 %v209_v30, %v210_v32  ;;  %v219_v37 = vand.u32 4294901760, %v218_v35  ;;  %v2566_v40 = vpack.c.bf16 %v217_v33, %v210_v32  ;;  %p2472_p4 = pnand %p2471_p3, %p2465_p0 }
   0xe   :  { %v212_v36 = vand.u32 4294901760, %v211_v34 }
  0x10   :  { %v2560_v38 = vpack.c.bf16 %v219_v37, %v212_v36 }
  0x12   :  { %2372 = vmatpush3.bf16.msra.mxu0 %v2560_v38 }
  0x13   :  { %2373 = vmatprep.subr.bf16.mxu0 %v2488_v3 }
  0xde   :  { %v94_v10 = vpop.f32.mrb[0].mxu0 }
  0xdf   :  { %v95_v11 = vadd.f32 %v94_v10, %v23_v9  ;;  %v2174_v12 = vpop.f32.mrb[1].mxu0 }
  0xe1   :  { %v101_v13 = vsel %vm100_vm2, %v95_v11, -inf }
  0xe2   :  { %102 = vmax.xlane.f32.xlu0 %v101_v13 }
 0x16f   :  { %v103_v16 = vpop.xlane.xlu0 %102 }
 0x170   :  { %vm104_vm3 = vcmp.eq.f32.partialorder %v95_v11, %v103_v16 }
 0x171   :  { %v105_v17 = vsel %vm104_vm3, %v2546_v15, 16 }
 0x172   :  { %v106_v18 = vsel %vm100_vm2, %v105_v17, 2147483647 }
 0x173   :  { %v108_v19 = vshra.s32 %v106_v18, 16  ;;  %v107_v21 = vand.u32 65535, %v106_v18 }
 0x175   :  { %v110_v20 = vcvt.s32.f32 %v108_v19  ;;  %v109_v23 = vcvt.s32.f32 %v107_v21 }
 0x177   :  { %111 = vmin.xlane.f32.xlu0 %v110_v20 }
 0x204   :  { %v112_v22 = vpop.xlane.xlu0 %111 }
 0x205   :  { %vm113_vm4 = vcmp.eq.f32.partialorder %v110_v20, %v112_v22  ;;  %v118_v41 = vcvt.f32.s32 %v112_v22 }
 0x206   :  { %v114_v24 = vsel %vm113_vm4, %v109_v23, inf }
 0x207   :  { %115 = vmin.xlane.f32.xlu1 %v114_v24  ;;  %v119_v43 = vshll.u32 %v118_v41, 16 }
 0x294   :  { %v116_v42 = vpop.xlane.xlu1 %115 }
 0x295   :  { %v117_v44 = vcvt.f32.s32 %v116_v42 }
 0x297   :  { %v120_v45 = vadd.s32 %v119_v43, %v117_v44 }
 0x299   :  { %vm121_vm5 = vcmp.eq.s32.totalorder %v2546_v15, %v120_v45 }
 0x29a   :  { %v122_v46 = vsel %vm121_vm5, -inf, %v95_v11  ;;  %v2071_v47 = vsel %vm121_vm5, 1.0, %v2490_v6 }
 0x29b   :  { %v128_v48 = vsel %vm100_vm2, %v2071_v47, 0  ;;  %v590_v49 = vsel %vm100_vm2, %v122_v46, -inf }
 0x29c   :  { %591 = vmax.xlane.f32.xlu1 %v590_v49  ;;  %v198_v50 = vsub.f32 %v128_v48, %v128_v48 }
 0x29e   :  { %v199_v51 = vand.u32 4294901760, %v198_v50 }
 0x2a0   :  { %v200_v52 = vsub.f32 %v198_v50, %v199_v51 }
 0x2a2   :  { %v201_v53 = vand.u32 4294901760, %v200_v52 }
 0x2a4   :  { %2180 = vmatmul.mubr.f32.vlgmr.msra.gmra.mrb[0].mxu1 %v201_v53 }
 0x2a5   :  { %2354 = vmatpush3.bf16.msra.mxu1 %v2560_v38  ;;  %2186 = vmatprep.mubr.msk.f32.mxu1 %vm2489_vm0, %v2490_v6 }
 0x2a6   :  { %2355 = vmatprep.subr.bf16.mxu1 %v2488_v3 }
 0x2ac   :  { %2187 = vmatmul.mubr.msk.f32.vlgmr.msra.gmra.mrb[0].mxu1 %vm100_vm2, %v2071_v47 }
 0x2ad   :  { %2357 = vmatpush3.bf16.msra.mxu1 %v2564_v39  ;;  %2193 = vmatprep.mubr.msk.f32.mxu1 %vm2489_vm0, %v2490_v6 }
 0x2ae   :  { %2358 = vmatprep.subr.bf16.mxu1 %v2488_v3 }
 0x2b4   :  { %2194 = vmatmul.mubr.f32.vlgmr.msra.gmra.mrb[0].mxu1 %v198_v50 }
 0x2b5   :  { %2360 = vmatpush3.bf16.msra.mxu1 %v2556_v29  ;;  %2200 = vmatprep.mubr.msk.f32.mxu1 %vm2489_vm0, %v2490_v6 }
 0x2b6   :  { %2361 = vmatprep.subr.bf16.mxu1 %v2488_v3 }
 0x2bc   :  { %2201 = vmatmul.mubr.f32.vlgmr.msra.gmra.mrb[0].mxu1 %v199_v51 }
 0x2bd   :  { %2363 = vmatpush3.bf16.msra.mxu1 %v2566_v40  ;;  %2207 = vmatprep.mubr.msk.f32.mxu1 %vm2489_vm0, %v2490_v6 }
 0x2be   :  { %2364 = vmatprep.subr.bf16.mxu1 %v2488_v3 }
 0x2c4   :  { %2208 = vmatmul.mubr.msk.f32.vlgmr.msra.gmra.mrb[0].mxu1 %vm100_vm2, %v2071_v47 }
 0x2c5   :  { %2366 = vmatpush3.bf16.msra.mxu1 %v2556_v29  ;;  %2214 = vmatprep.mubr.msk.f32.mxu1 %vm2489_vm0, %v2490_v6 }
 0x2c6   :  { %2367 = vmatprep.subr.bf16.mxu1 %v2488_v3 }
 0x2cc   :  { %2215 = vmatmul.mubr.msk.f32.vlgmr.msra.gmra.mrb[0].mxu1 %vm100_vm2, %v2071_v47 }
 0x2cd   :  { %2369 = vmatpush3.bf16.msra.mxu1 %v2556_v29  ;;  %2221 = vmatprep.mubr.msk.f32.mxu1 %vm2489_vm0, %v2490_v6 }
 0x2ce   :  { %2385 = vmatprep.subr.bf16.mxu1 %v2488_v3 }
 0x329   :  { %v592_v54 = vpop.xlane.xlu1 %591 }
 0x32a   :  { %vm593_vm6 = vcmp.eq.f32.partialorder %v122_v46, %v592_v54 }
 0x32b   :  { %v594_v55 = vsel %vm593_vm6, %v2546_v15, 16 }
 0x32c   :  { %v595_v56 = vsel %vm100_vm2, %v594_v55, 2147483647 }
 0x32d   :  { %v597_v57 = vshra.s32 %v595_v56, 16  ;;  %v596_v61 = vand.u32 65535, %v595_v56 }
 0x32f   :  { %v599_v58 = vcvt.s32.f32 %v597_v57  ;;  %v598_v63 = vcvt.s32.f32 %v596_v61 }
 0x331   :  { %600 = vmin.xlane.f32.xlu0 %v599_v58 }
 0x39f   :  { %v585_v59 = vpop.f32.mrb[0].mxu1 }
 0x3a0   :  { %589 = vst [vmem:[#allocation2] sm:$0xff] %v585_v59  ;;  %v2216_v60 = vpop.f32.mrb[1].mxu1 }
 0x3be   :  { %v601_v62 = vpop.xlane.xlu0 %600 }
 0x3bf   :  { %vm602_vm7 = vcmp.eq.f32.partialorder %v599_v58, %v601_v62  ;;  %v607_v1 = vcvt.f32.s32 %v601_v62 }
 0x3c0   :  { %v603_v0 = vsel %vm602_vm7, %v598_v63, inf }
 0x3c1   :  { %604 = vmin.xlane.f32.xlu1 %v603_v0  ;;  %v608_v4 = vshll.u32 %v607_v1, 16 }
 0x44e   :  { %v605_v2 = vpop.xlane.xlu1 %604 }
 0x44f   :  { %v606_v5 = vcvt.f32.s32 %v605_v2 }
 0x451   :  { %v609_v7 = vadd.s32 %v608_v4, %v606_v5 }
 0x453   :  { %vm610_vm8 = vcmp.eq.s32.totalorder %v2546_v15, %v609_v7 }
 0x454   :  { %v2075_v8 = vsel %vm610_vm8, 1.0, %v2490_v6  ;;  %v611_v9 = vsel %vm610_vm8, -inf, %v122_v46 }
 0x455   :  { %2229 = vmatmul.mubr.msk.f32.vlgmr.msra.gmra.mrb[2].mxu0 %vm100_vm2, %v2075_v8  ;;  %v1079_v10 = vsel %vm100_vm2, %v611_v9, -inf  ;;  %v617_v11 = vsel %vm100_vm2, %v2075_v8, 0 }
 0x456   :  { %1080 = vmax.xlane.f32.xlu0 %v1079_v10  ;;  %2375 = vmatpush3.bf16.msra.mxu0 %v2564_v39  ;;  %v687_v12 = vsub.f32 %v617_v11, %v617_v11 }
 0x457   :  { %2235 = vmatprep.mubr.msk.f32.mxu0 %vm2489_vm0, %v2490_v6  ;;  %2376 = vmatprep.subr.bf16.mxu0 %v2488_v3 }
 0x458   :  { %v688_v13 = vand.u32 4294901760, %v687_v12 }
 0x45a   :  { %v689_v14 = vsub.f32 %v687_v12, %v688_v13 }
 0x45c   :  { %v690_v16 = vand.u32 4294901760, %v689_v14 }
 0x45d   :  { %2236 = vmatmul.mubr.f32.vlgmr.msra.gmra.mrb[2].mxu0 %v687_v12 }
 0x45e   :  { %2222 = vmatmul.mubr.f32.vlgmr.msra.gmra.mrb[2].mxu1 %v690_v16  ;;  %2378 = vmatpush3.bf16.msra.mxu0 %v2556_v29 }
 0x45f   :  { %2242 = vmatprep.mubr.msk.f32.mxu0 %vm2489_vm0, %v2490_v6  ;;  %2379 = vmatprep.subr.bf16.mxu0 %v2488_v3 }
 0x460   :  { %2387 = vmatpush3.bf16.msra.mxu1 %v2556_v29  ;;  %2263 = vmatprep.mubr.msk.f32.mxu1 %vm2489_vm0, %v2490_v6 }
 0x461   :  { %2388 = vmatprep.subr.bf16.mxu1 %v2488_v3 }
 0x465   :  { %2243 = vmatmul.mubr.f32.vlgmr.msra.gmra.mrb[2].mxu0 %v688_v13 }
 0x466   :  { %2381 = vmatpush3.bf16.msra.mxu0 %v2566_v40  ;;  %2249 = vmatprep.mubr.msk.f32.mxu0 %vm2489_vm0, %v2490_v6 }
 0x467   :  { %2382 = vmatprep.subr.bf16.mxu0 %v2488_v3 }
 0x46d   :  { %2250 = vmatmul.mubr.msk.f32.vlgmr.msra.gmra.mrb[2].mxu0 %vm100_vm2, %v2075_v8 }
 0x46e   :  { %2384 = vmatpush3.bf16.msra.mxu0 %v2556_v29  ;;  %2256 = vmatprep.mubr.msk.f32.mxu0 %vm2489_vm0, %v2490_v6 }
 0x46f   :  { %2403 = vmatprep.subr.bf16.mxu0 %v2488_v3 }
 0x475   :  { %2257 = vmatmul.mubr.msk.f32.vlgmr.msra.gmra.mrb[2].mxu0 %vm100_vm2, %v2075_v8 }
 0x476   :  { %2405 = vmatpush3.bf16.msra.mxu0 %v2556_v29  ;;  %2305 = vmatprep.mubr.msk.f32.mxu0 %vm2489_vm0, %v2490_v6 }
 0x477   :  { %2406 = vmatprep.subr.bf16.mxu0 %v2488_v3 }
 0x4e3   :  { %v1081_v17 = vpop.xlane.xlu0 %1080 }
 0x4e4   :  { %vm1082_vm9 = vcmp.eq.f32.partialorder %v611_v9, %v1081_v17 }
 0x4e5   :  { %v1083_v18 = vsel %vm1082_vm9, %v2546_v15, 16 }
 0x4e6   :  { %v1084_v19 = vsel %vm100_vm2, %v1083_v18, 2147483647 }
 0x4e7   :  { %v1086_v20 = vshra.s32 %v1084_v19, 16  ;;  %v1085_v27 = vand.u32 65535, %v1084_v19 }
 0x4e9   :  { %v1088_v21 = vcvt.s32.f32 %v1086_v20  ;;  %v1087_v30 = vcvt.s32.f32 %v1085_v27 }
 0x4eb   :  { %1089 = vmin.xlane.f32.xlu1 %v1088_v21 }
 0x531   :  { %v692_v22 = vpop.f32.mrb[2].mxu1 }
 0x532   :  { %v2223_v23 = vpop.f32.mrb[3].mxu1 }
 0x548   :  { %v1074_v24 = vpop.f32.mrb[2].mxu0 }
 0x549   :  { %v2421_v25 = vadd.f32 %v1074_v24, %v692_v22  ;;  %v2258_v26 = vpop.f32.mrb[3].mxu0 }
 0x54b   :  { %1078 = vst [vmem:[#allocation2 + $0x8] sm:$0xff] %v2421_v25 }
 0x578   :  { %v1090_v28 = vpop.xlane.xlu1 %1089 }
 0x579   :  { %vm1091_vm10 = vcmp.eq.f32.partialorder %v1088_v21, %v1090_v28  ;;  %v1096_v32 = vcvt.f32.s32 %v1090_v28 }
 0x57a   :  { %v1092_v31 = vsel %vm1091_vm10, %v1087_v30, inf }
 0x57b   :  { %1093 = vmin.xlane.f32.xlu0 %v1092_v31  ;;  %v1097_v34 = vshll.u32 %v1096_v32, 16 }
 0x608   :  { %v1094_v33 = vpop.xlane.xlu0 %1093 }
 0x609   :  { %v1095_v35 = vcvt.f32.s32 %v1094_v33 }
 0x60b   :  { %v1098_v36 = vadd.s32 %v1097_v34, %v1095_v35 }
 0x60d   :  { %vm1099_vm11 = vcmp.eq.s32.totalorder %v2546_v15, %v1098_v36 }
 0x60e   :  { %v1100_v37 = vsel %vm1099_vm11, -inf, %v611_v9  ;;  %v2079_v41 = vsel %vm1099_vm11, 1.0, %v2490_v6 }
 0x60f   :  { %v1106_v42 = vsel %vm100_vm2, %v2079_v41, 0  ;;  %v1568_v43 = vsel %vm100_vm2, %v1100_v37, -inf }
 0x610   :  { %v1176_v44 = vsub.f32 %v1106_v42, %v1106_v42  ;;  %1569 = vmax.xlane.f32.xlu1 %v1568_v43 }
 0x612   :  { %v1177_v45 = vand.u32 4294901760, %v1176_v44 }
 0x614   :  { %v1178_v46 = vsub.f32 %v1176_v44, %v1177_v45 }
 0x616   :  { %v1179_v47 = vand.u32 4294901760, %v1178_v46 }
 0x618   :  { %2264 = vmatmul.mubr.f32.vlgmr.msra.gmra.mrb[4].mxu1 %v1179_v47 }
 0x619   :  { %2390 = vmatpush3.bf16.msra.mxu1 %v2560_v38  ;;  %2270 = vmatprep.mubr.msk.f32.mxu1 %vm2489_vm0, %v2490_v6 }
 0x61a   :  { %2391 = vmatprep.subr.bf16.mxu1 %v2488_v3 }
 0x620   :  { %2271 = vmatmul.mubr.msk.f32.vlgmr.msra.gmra.mrb[4].mxu1 %vm100_vm2, %v2079_v41 }
 0x621   :  { %2393 = vmatpush3.bf16.msra.mxu1 %v2564_v39  ;;  %2277 = vmatprep.mubr.msk.f32.mxu1 %vm2489_vm0, %v2490_v6 }
 0x622   :  { %2394 = vmatprep.subr.bf16.mxu1 %v2488_v3 }
 0x628   :  { %2278 = vmatmul.mubr.f32.vlgmr.msra.gmra.mrb[4].mxu1 %v1176_v44 }
 0x629   :  { %2396 = vmatpush3.bf16.msra.mxu1 %v2556_v29  ;;  %2284 = vmatprep.mubr.msk.f32.mxu1 %vm2489_vm0, %v2490_v6 }
 0x62a   :  { %2397 = vmatprep.subr.bf16.mxu1 %v2488_v3 }
 0x630   :  { %2285 = vmatmul.mubr.f32.vlgmr.msra.gmra.mrb[4].mxu1 %v1177_v45 }
 0x631   :  { %2399 = vmatpush3.bf16.msra.mxu1 %v2566_v40  ;;  %2291 = vmatprep.mubr.msk.f32.mxu1 %vm2489_vm0, %v2490_v6 }
 0x632   :  { %2400 = vmatprep.subr.bf16.mxu1 %v2488_v3 }
 0x638   :  { %2292 = vmatmul.mubr.msk.f32.vlgmr.msra.gmra.mrb[4].mxu1 %vm100_vm2, %v2079_v41 }
 0x639   :  { %2402 = vmatpush3.bf16.msra.mxu1 %v2556_v29  ;;  %2298 = vmatprep.mubr.msk.f32.mxu1 %vm2489_vm0, %v2490_v6 }
 0x640   :  { %2299 = vmatmul.mubr.msk.f32.vlgmr.msra.gmra.mrb[4].mxu1 %vm100_vm2, %v2079_v41 }
 0x69d   :  { %v1570_v48 = vpop.xlane.xlu1 %1569 }
 0x69e   :  { %vm1571_vm12 = vcmp.eq.f32.partialorder %v1100_v37, %v1570_v48 }
 0x69f   :  { %v1572_v49 = vsel %vm1571_vm12, %v2546_v15, 16 }
 0x6a0   :  { %v1573_v50 = vsel %vm100_vm2, %v1572_v49, 2147483647 }
 0x6a1   :  { %v1575_v51 = vshra.s32 %v1573_v50, 16  ;;  %v1574_v55 = vand.u32 65535, %v1573_v50 }
 0x6a3   :  { %v1577_v52 = vcvt.s32.f32 %v1575_v51  ;;  %v1576_v57 = vcvt.s32.f32 %v1574_v55 }
 0x6a5   :  { %1578 = vmin.xlane.f32.xlu0 %v1577_v52 }
 0x713   :  { %v1563_v53 = vpop.f32.mrb[4].mxu1 }
 0x714   :  { %1567 = vst [vmem:[#allocation2 + $0x10] sm:$0xff] %v1563_v53  ;;  %v2300_v54 = vpop.f32.mrb[5].mxu1 }
 0x732   :  { %v1579_v56 = vpop.xlane.xlu0 %1578 }
 0x733   :  { %vm1580_vm13 = vcmp.eq.f32.partialorder %v1577_v52, %v1579_v56  ;;  %v1585_v59 = vcvt.f32.s32 %v1579_v56 }
 0x734   :  { %v1581_v58 = vsel %vm1580_vm13, %v1576_v57, inf }
 0x735   :  { %1582 = vmin.xlane.f32.xlu1 %v1581_v58  ;;  %v1586_v61 = vshll.u32 %v1585_v59, 16 }
 0x7c2   :  { %v1583_v60 = vpop.xlane.xlu1 %1582 }
 0x7c3   :  { %v1584_v62 = vcvt.f32.s32 %v1583_v60 }
 0x7c5   :  { %v1587_v63 = vadd.s32 %v1586_v61, %v1584_v62 }
 0x7c7   :  { %vm1588_vm14 = vcmp.eq.s32.totalorder %v2546_v15, %v1587_v63 }
 0x7c8   :  { %v2083_v0 = vsel %vm1588_vm14, 1.0, %v2490_v6 }
 0x7c9   :  { %v1594_v1 = vsel %vm100_vm2, %v2083_v0, 0 }
 0x7ca   :  { %v1664_v2 = vsub.f32 %v1594_v1, %v1594_v1 }
 0x7cc   :  { %v1665_v4 = vand.u32 4294901760, %v1664_v2 }
 0x7ce   :  { %v1666_v5 = vsub.f32 %v1664_v2, %v1665_v4 }
 0x7d0   :  { %v1667_v7 = vand.u32 4294901760, %v1666_v5 }
 0x7d2   :  { %2306 = vmatmul.mubr.f32.vlgmr.msra.gmra.mrb[4].mxu0 %v1667_v7 }
 0x7d3   :  { %2408 = vmatpush3.bf16.msra.mxu0 %v2560_v38  ;;  %2312 = vmatprep.mubr.msk.f32.mxu0 %vm2489_vm0, %v2490_v6 }
 0x7d4   :  { %2409 = vmatprep.subr.bf16.mxu0 %v2488_v3 }
 0x7da   :  { %2313 = vmatmul.mubr.msk.f32.vlgmr.msra.gmra.mrb[4].mxu0 %vm100_vm2, %v2083_v0 }
 0x7db   :  { %2411 = vmatpush3.bf16.msra.mxu0 %v2564_v39  ;;  %2319 = vmatprep.mubr.msk.f32.mxu0 %vm2489_vm0, %v2490_v6 }
 0x7dc   :  { %2412 = vmatprep.subr.bf16.mxu0 %v2488_v3 }
 0x7e2   :  { %2320 = vmatmul.mubr.f32.vlgmr.msra.gmra.mrb[4].mxu0 %v1664_v2 }
 0x7e3   :  { %2414 = vmatpush3.bf16.msra.mxu0 %v2556_v29  ;;  %2326 = vmatprep.mubr.msk.f32.mxu0 %vm2489_vm0, %v2490_v6 }
 0x7e4   :  { %2415 = vmatprep.subr.bf16.mxu0 %v2488_v3 }
 0x7ea   :  { %2327 = vmatmul.mubr.f32.vlgmr.msra.gmra.mrb[4].mxu0 %v1665_v4 }
 0x7eb   :  { %2417 = vmatpush3.bf16.msra.mxu0 %v2566_v40  ;;  %2333 = vmatprep.mubr.msk.f32.mxu0 %vm2489_vm0, %v2490_v6 }
 0x7ec   :  { %2418 = vmatprep.subr.bf16.mxu0 %v2488_v3 }
 0x7f2   :  { %2334 = vmatmul.mubr.msk.f32.vlgmr.msra.gmra.mrb[4].mxu0 %vm100_vm2, %v2083_v0 }
 0x7f3   :  { %2420 = vmatpush3.bf16.msra.mxu0 %v2556_v29  ;;  %2340 = vmatprep.mubr.msk.f32.mxu0 %vm2489_vm0, %v2490_v6 }
 0x7fa   :  { %2341 = vmatmul.mubr.msk.f32.vlgmr.msra.gmra.mrb[4].mxu0 %vm100_vm2, %v2083_v0 }
 0x8cd   :  { %v2051_v15 = vpop.f32.mrb[4].mxu0 }
 0x8ce   :  { %2055 = vst [vmem:[#allocation2 + $0x18] sm:$0xff] %v2051_v15  ;;  %v2342_v38 = vpop.f32.mrb[5].mxu0 }
 0x8cf   :  { %2475 = shalt.err (!%p2472_p4)
}
 0x8d0   :  { %s2476_s6 = scalar_lea.hbm %s2703_s4, 512 }
 0x8d1   :  { %p2477_p5 = scmp.ne.s32.totalorder %s2703_s4, %s2476_s6  ;;  %p2480_p6 = scmp.lt.u32.totalorder %s2476_s6, %s2703_s4 }
 0x8d3   :  { %p2482_p7 = pnand %p2480_p6, %p2477_p5 }
 0x8d5   :  { %2485 = shalt.err (!%p2482_p7)
}
 0x8d6   :  { %2065 = dma.vmem_to_hbm [thread:$0]  %s2063_s28, 512, %s2703_s4, [#allocation3]  }
 0x8d7   :  { %2486 = dma.done.wait [#allocation3], 512  }
 0x8d8   :  { %2487 = vsyncadd [#allocation3], 4294966784 }
 0x8d9   :  { %2069 = vsyncpa [#allocation3], 1 }

</bundles_post_ra>
